<compile_context>
chip_gen: v5e
topology: v5e:2x2
jax: 0.10.0
libtpu: 0.0.40
codegen_flags: <defaults>
</compile_context>

<pallas_src>
import jax
import jax.numpy as jnp
from jax.experimental import pallas as pl
from jax.experimental.pallas import tpu as pltpu

LANE = 128
_VMEM_BUDGET_BYTES = 40 * 1024 * 1024   # tile-selection budget (v7x-safe)
_VMEM_LIMIT_BYTES = 48 * 1024 * 1024    # scoped limit handed to Mosaic


def _round_up(x, m):
    return (x + m - 1) // m * m


# ----------------------------------------------------------------------------
# Pallas kernel: one GCN layer, K-tiled over the node axis:
#   acc  += A[i, k] @ X[k, :]            (bf16 x bf16 -> f32 accumulate, MXU)
#   out_i = relu(acc @ W + b)            (f32 finalize, once per row tile)
# ----------------------------------------------------------------------------
def _make_gcn_kernel(tile_k, x_resident):
    def kernel(a_ref, x_ref, w_ref, b_ref, o_ref, acc_ref):
        # a_ref:   (TN, TK)             bf16  adjacency tile
        # x_ref:   (N_pad, F_in) or (TK, F_in)  bf16  node features
        # w_ref:   (F_in, F_out)        f32   weights (lane-padded, tiny)
        # b_ref:   (1, F_out)           f32   bias (lane-padded)
        # o_ref:   (TN, F_out)          bf16  output row tile (lane-dense)
        # acc_ref: (TN, F_in)           f32   VMEM accumulator for A @ X
        k = pl.program_id(1)

        @pl.when(k == 0)
        def _():
            acc_ref[...] = jnp.zeros_like(acc_ref)

        if x_resident:
            start = pl.multiple_of(k * tile_k, tile_k)
            x_blk = x_ref[pl.ds(start, tile_k), :]
        else:
            x_blk = x_ref[...]

        acc_ref[...] += jnp.dot(
            a_ref[...], x_blk, preferred_element_type=jnp.float32
        )

        @pl.when(k == pl.num_programs(1) - 1)
        def _():
            # Small matmul + epilogue exactly once per row tile; f32 acc is
            # fed straight to the MXU (no precision-dropping bf16 cast).
            h = jnp.dot(
                acc_ref[...], w_ref[...], preferred_element_type=jnp.float32
            )
            h = h + b_ref[...]
            o_ref[...] = jnp.maximum(h, 0.0).astype(o_ref.dtype)

    return kernel


def gcn_layer(a_hat, x, w, b, *, tile_n, tile_k, x_resident):
    """relu((A_hat @ x) @ w + b) on padded, lane-dense operands.

    a_hat: (N_pad, N_pad) bf16, x: (N_pad, F_in_pad) bf16,
    w: (F_in_pad, F_out_pad) f32, b: (1, F_out_pad) f32.
    Returns (N_pad, F_out_pad) bf16.
    """
    n_pad = a_hat.shape[0]
    f_in = x.shape[1]
    f_out = w.shape[1]
    assert n_pad % tile_n == 0 and n_pad % tile_k == 0
    grid = (n_pad // tile_n, n_pad // tile_k)

    if x_resident:
        # Whole X held in VMEM (constant block index -> DMAed once per layer),
        # sliced per k step inside the kernel: only A streams per grid step.
        x_spec = pl.BlockSpec((n_pad, f_in), lambda i, k: (0, 0))
        x_bytes = x.size * x.dtype.itemsize
    else:
        x_spec = pl.BlockSpec((tile_k, f_in), lambda i, k: (k, 0))
        x_bytes = x.size * x.dtype.itemsize * (n_pad // tile_n)  # re-read factor

    cost = pl.CostEstimate(
        flops=2 * n_pad * n_pad * f_in + 2 * n_pad * f_in * f_out,
        transcendentals=0,
        bytes_accessed=(
            a_hat.size * a_hat.dtype.itemsize
            + x_bytes
            + w.size * w.dtype.itemsize
            + b.size * b.dtype.itemsize
            + n_pad * f_out * 2
        ),
    )

    return pl.pallas_call(
        _make_gcn_kernel(tile_k, x_resident),
        out_shape=jax.ShapeDtypeStruct((n_pad, f_out), jnp.bfloat16),
        grid_spec=pltpu.PrefetchScalarGridSpec(
            num_scalar_prefetch=0,
            grid=grid,
            in_specs=[
                # A tile.  If profiling shows exposed A DMA, add
                # pipeline_mode=pl.Buffered(3) here (one extra A tile of VMEM).
                pl.BlockSpec((tile_n, tile_k), lambda i, k: (i, k)),
                x_spec,
                pl.BlockSpec((f_in, f_out), lambda i, k: (0, 0)),   # W (f32)
                pl.BlockSpec((1, f_out), lambda i, k: (0, 0)),      # bias
            ],
            out_specs=pl.BlockSpec((tile_n, f_out), lambda i, k: (i, 0)),
            scratch_shapes=[pltpu.VMEM((tile_n, f_in), jnp.float32)],
        ),
        compiler_params=pltpu.CompilerParams(
            dimension_semantics=("parallel", "arbitrary"),
            vmem_limit_bytes=_VMEM_LIMIT_BYTES,
        ),
        cost_estimate=cost,
    )(a_hat, x, w, b)


# ----------------------------------------------------------------------------
# Tile / residency selection within a generation-safe VMEM budget
# ----------------------------------------------------------------------------
def _choose_tiling(n_pad, f_in_pad, f_out_pad):
    """Pick (tile_n, tile_k, x_resident) maximizing per-step work within VMEM."""

    def bytes_needed(tn, tk, x_resident):
        byt = 2 * tn * tk * 2                    # A tile, double-buffered bf16
        byt += tn * f_in_pad * 4                 # f32 accumulator scratch
        byt += 2 * tn * f_out_pad * 2            # output tile, double-buffered
        byt += 2 * f_in_pad * f_out_pad * 4      # W (f32), conservatively x2
        byt += 2 * f_out_pad * 4                 # bias
        if x_resident:
            byt += 2 * n_pad * f_in_pad * 2      # resident X, conservatively x2
        else:
            byt += 2 * tk * f_in_pad * 2         # streamed X slice
        return byt

    tn_cands = [t for t in (512, 384, 256, 128) if n_pad % t == 0]
    # Keep >= 2 row tiles where possible so v7x's two TensorCores both work.
    multi = [t for t in tn_cands if n_pad // t >= 2]
    if multi:
        tn_cands = multi
    # tile_k: any multiple of 128 dividing n_pad, up to 2048 (no padding cliff).
    tk_cands = [t for t in range(min(n_pad, 2048), 0, -128) if n_pad % t == 0]

    best = None
    for x_resident in (True, False):
        for tn in tn_cands:
            for tk in tk_cands:
                if bytes_needed(tn, tk, x_resident) > _VMEM_BUDGET_BYTES:
                    continue
                key = (1 if x_resident else 0, tn * tk, tn)
                if best is None or key > best[0]:
                    best = (key, (tn, tk, x_resident))
    if best is None:
        return 128, 128, False
    return best[1]


# ----------------------------------------------------------------------------
# Glue: dense normalized adjacency from edge_index, padding, params, forward
# ----------------------------------------------------------------------------
def build_norm_adj(edge_index, num_nodes):
    """Symmetrically normalized adjacency with remaining self loops (GCN)."""
    src = edge_index[0]
    dst = edge_index[1]
    a = jnp.zeros((num_nodes, num_nodes), jnp.float32).at[dst, src].add(1.0)
    idx = jnp.arange(num_nodes)
    diag = a[idx, idx]
    # add_remaining_self_loops: only nodes lacking a self loop get weight 1.
    a = a.at[idx, idx].set(jnp.where(diag > 0.0, diag, 1.0))
    deg = a.sum(axis=1)
    d_inv_sqrt = jax.lax.rsqrt(jnp.maximum(deg, 1e-12))
    return d_inv_sqrt[:, None] * a * d_inv_sqrt[None, :]


def init_graph_encoder_params(key, input_size, output_size, num_layers):
    params = []
    in_dim = input_size
    for _ in range(num_layers):
        key, kw, kb = jax.random.split(key, 3)
        limit = 1.0 / jnp.sqrt(jnp.float32(in_dim))
        w = jax.random.uniform(kw, (in_dim, output_size), jnp.float32,
                               minval=-limit, maxval=limit)
        b = jax.random.uniform(kb, (output_size,), jnp.float32,
                               minval=-limit, maxval=limit)
        params.append((w, b))
        in_dim = output_size
    return params


def graph_encoder_forward(params, x, edge_index):
    """Matches GraphEncoder.forward: x = relu(GCNConv_i(x, edge_index))."""
    n, f_in = x.shape
    n_pad = _round_up(n, LANE)                  # pad only to 128: no tile_k cliff
    f_in_pad = _round_up(f_in, LANE)
    f_out_pad = _round_up(params[0][0].shape[1], LANE)

    tile_n, tile_k, x_resident = _choose_tiling(
        n_pad, max(f_in_pad, f_out_pad), f_out_pad)

    # A_hat built once in f32, cast to bf16 *before* padding (no f32 N_pad^2
    # intermediate in HBM), reused for every layer.
    a_hat = build_norm_adj(edge_index, n).astype(jnp.bfloat16)
    a_pad = jnp.zeros((n_pad, n_pad), jnp.bfloat16).at[:n, :n].set(a_hat)

    # Zero padding keeps the math exact for real rows: padded A columns are 0,
    # padded W rows / bias entries are 0, so padded activations never leak
    # into real outputs and can be chained between layers unsliced.
    h = jnp.zeros((n_pad, f_in_pad), jnp.bfloat16).at[:n, :f_in].set(
        x.astype(jnp.bfloat16))

    for w, b in params:
        fi, fo = w.shape
        fi_pad = _round_up(fi, LANE)
        fo_pad = _round_up(fo, LANE)
        assert h.shape[1] == fi_pad
        # W / bias stay f32 (tiny); the finalize matmul consumes the f32
        # accumulator directly, so no precision is dropped before @W.
        w_pad = jnp.zeros((fi_pad, fo_pad), jnp.float32).at[:fi, :fo].set(w)
        b_pad = jnp.zeros((1, fo_pad), jnp.float32).at[0, :fo].set(b)
        h = gcn_layer(a_pad, h, w_pad, b_pad,
                      tile_n=tile_n, tile_k=tile_k, x_resident=x_resident)

    f_out = params[-1][0].shape[1]
    return h[:n, :f_out].astype(jnp.float32)


def graph_encoder_reference(params, x, edge_index):
    """Pure-JAX f32 reference for correctness checking."""
    n = x.shape[0]
    a_hat = build_norm_adj(edge_index, n)
    for w, b in params:
        x = jnp.maximum(a_hat @ (x @ w) + b[None, :], 0.0)
    return x


if __name__ == "__main__":
    # Small, deterministic problem: 16 nodes, 4 input features, 32 hidden,
    # 2 GCN layers, ReLU activation.
    N = 16
    INPUT_SIZE = 4
    OUTPUT_SIZE = 32
    NUM_LAYERS = 2

    key = jax.random.PRNGKey(0)
    key, kx = jax.random.split(key)
    x = jax.random.normal(kx, (N, INPUT_SIZE), jnp.float32)

    # Deterministic bidirectional ring graph as edge_index [2, E].
    src = jnp.concatenate([jnp.arange(N), (jnp.arange(N) + 1) % N])
    dst = jnp.concatenate([(jnp.arange(N) + 1) % N, jnp.arange(N)])
    edge_index = jnp.stack([src, dst]).astype(jnp.int32)

    params = init_graph_encoder_params(key, INPUT_SIZE, OUTPUT_SIZE, NUM_LAYERS)

    out = graph_encoder_forward(params, x, edge_index)
    out = jax.block_until_ready(out)

    ref = graph_encoder_reference(params, x, edge_index)
    assert out.shape == (N, OUTPUT_SIZE), out.shape
    # bf16 A / activations on the MXU with f32 accumulation -> loose tolerance.
    assert jnp.allclose(out, ref, atol=5e-2, rtol=5e-2), (
        "mismatch vs reference, max abs err = "
        f"{float(jnp.max(jnp.abs(out - ref)))}")

    print("KERNEL_OK")
</pallas_src>

<mosaic_0001>
module attributes {stable_mosaic.version = 11 : i64} {
  func.func @kernel(%arg0: i32, %arg1: i32, %arg2: memref<128x128xbf16, #tpu.memory_space<vmem>>, %arg3: memref<128x128xbf16, #tpu.memory_space<vmem>>, %arg4: memref<128x128xf32, #tpu.memory_space<vmem>>, %arg5: memref<1x128xf32, #tpu.memory_space<vmem>>, %arg6: memref<128x128xbf16, #tpu.memory_space<vmem>>, %arg7: memref<128x128xf32, #tpu.memory_space<vmem>>) attributes {dimension_semantics = [#tpu.dimension_semantics<parallel>, #tpu.dimension_semantics<arbitrary>], iteration_bounds = array<i64: 1, 1>, scalar_prefetch = 0 : i64, scratch_operands = 1 : i64, tpu.core_type = #tpu.core_type<tc>, window_params = [{transform_indices = @transform_0, window_bounds = array<i64: 128, 128>}, {pipeline_mode = #tpu.pipeline_mode<synchronous>, transform_indices = @transform_1, window_bounds = array<i64: 128, 128>}, {pipeline_mode = #tpu.pipeline_mode<synchronous>, transform_indices = @transform_2, window_bounds = array<i64: 128, 128>}, {pipeline_mode = #tpu.pipeline_mode<synchronous>, transform_indices = @transform_3, window_bounds = array<i64: 1, 128>}, {transform_indices = @transform_4, window_bounds = array<i64: 128, 128>}]} {
    %c0_i32 = arith.constant 0 : i32
    %0 = arith.cmpi eq, %arg1, %c0_i32 : i32
    %1 = arith.extui %0 : i1 to i32
    %c0_i32_0 = arith.constant 0 : i32
    %2 = arith.cmpi ne, %1, %c0_i32_0 : i32
    scf.if %2 {
      %cst_9 = arith.constant 0.000000e+00 : f32
      %15 = vector.broadcast %cst_9 : f32 to vector<128x128xf32>
      %c0_10 = arith.constant 0 : index
      %c0_11 = arith.constant 0 : index
      %16 = vector.load %arg7[%c0_10, %c0_11] : memref<128x128xf32, #tpu.memory_space<vmem>>, vector<128x128xf32>
      tpu.vector_store %arg7[%c0_10, %c0_11], %15 {strides = array<i32>} : memref<128x128xf32, #tpu.memory_space<vmem>>, vector<128x128xf32>,
    } else {
    }
    %c128_i32 = arith.constant 128 : i32
    %3 = arith.muli %arg1, %c128_i32 : i32
    %4 = tpu.assume_multiple %3, 128 : i32
    %5 = arith.index_cast %4 : i32 to index
    %c0 = arith.constant 0 : index
    %6 = vector.load %arg3[%5, %c0] : memref<128x128xbf16, #tpu.memory_space<vmem>>, vector<128x128xbf16>
    %c0_1 = arith.constant 0 : index
    %c0_2 = arith.constant 0 : index
    %7 = vector.load %arg7[%c0_1, %c0_2] : memref<128x128xf32, #tpu.memory_space<vmem>>, vector<128x128xf32>
    %c0_3 = arith.constant 0 : index
    %c0_4 = arith.constant 0 : index
    %8 = vector.load %arg2[%c0_3, %c0_4] : memref<128x128xbf16, #tpu.memory_space<vmem>>, vector<128x128xbf16>
    %cst = arith.constant dense<0.000000e+00> : vector<128x128xf32>
    %9 = tpu.matmul %8, %6, %cst {dimension_numbers = #tpu.dot_dimension_numbers<[1], [0], [0], [1], [0, 0, 1, 1], [], []>} : vector<128x128xbf16>, vector<128x128xbf16>, vector<128x128xf32> -> vector<128x128xf32>
    %10 = arith.addf %7, %9 : vector<128x128xf32>
    %c0_5 = arith.constant 0 : index
    %c0_6 = arith.constant 0 : index
    %11 = vector.load %arg7[%c0_5, %c0_6] : memref<128x128xf32, #tpu.memory_space<vmem>>, vector<128x128xf32>
    tpu.vector_store %arg7[%c0_5, %c0_6], %10 {strides = array<i32>} : memref<128x128xf32, #tpu.memory_space<vmem>>, vector<128x128xf32>,
    %c0_i32_7 = arith.constant 0 : i32
    %12 = arith.cmpi eq, %arg1, %c0_i32_7 : i32
    %13 = arith.extui %12 : i1 to i32
    %c0_i32_8 = arith.constant 0 : i32
    %14 = arith.cmpi ne, %13, %c0_i32_8 : i32
    scf.if %14 {
      %c0_9 = arith.constant 0 : index
      %c0_10 = arith.constant 0 : index
      %15 = vector.load %arg7[%c0_9, %c0_10] : memref<128x128xf32, #tpu.memory_space<vmem>>, vector<128x128xf32>
      %c0_11 = arith.constant 0 : index
      %c0_12 = arith.constant 0 : index
      %16 = vector.load %arg4[%c0_11, %c0_12] : memref<128x128xf32, #tpu.memory_space<vmem>>, vector<128x128xf32>
      %cst_13 = arith.constant dense<0.000000e+00> : vector<128x128xf32>
      %17 = tpu.matmul %15, %16, %cst_13 {dimension_numbers = #tpu.dot_dimension_numbers<[1], [0], [0], [1], [0, 0, 1, 1], [], []>} : vector<128x128xf32>, vector<128x128xf32>, vector<128x128xf32> -> vector<128x128xf32>
      %c0_14 = arith.constant 0 : index
      %c0_15 = arith.constant 0 : index
      %18 = vector.load %arg5[%c0_14, %c0_15] : memref<1x128xf32, #tpu.memory_space<vmem>>, vector<1x128xf32>
      %19 = vector.broadcast %18 : vector<1x128xf32> to vector<128x128xf32>
      %20 = arith.addf %17, %19 : vector<128x128xf32>
      %cst_16 = arith.constant 0.000000e+00 : f32
      %21 = vector.broadcast %cst_16 : f32 to vector<128x128xf32>
      %22 = arith.maximumf %20, %21 : vector<128x128xf32>
      %23 = arith.truncf %22 : vector<128x128xf32> to vector<128x128xbf16>
      %c0_17 = arith.constant 0 : index
      %c0_18 = arith.constant 0 : index
      %24 = vector.load %arg6[%c0_17, %c0_18] : memref<128x128xbf16, #tpu.memory_space<vmem>>, vector<128x128xbf16>
      tpu.vector_store %arg6[%c0_17, %c0_18], %23 {strides = array<i32>} : memref<128x128xbf16, #tpu.memory_space<vmem>>, vector<128x128xbf16>,
    } else {
    }
    return
  }
  func.func @transform_0(%arg0: i32, %arg1: i32) -> (i32, i32) {
    %c0_i32 = arith.constant 0 : i32
    return %arg0, %arg1 : i32, i32
  }
  func.func @transform_1(%arg0: i32, %arg1: i32) -> (i32, i32) {
    %c0_i32 = arith.constant 0 : i32
    %c0_i32_0 = arith.constant 0 : i32
    %c0_i32_1 = arith.constant 0 : i32
    return %c0_i32, %c0_i32_0 : i32, i32
  }
  func.func @transform_2(%arg0: i32, %arg1: i32) -> (i32, i32) {
    %c0_i32 = arith.constant 0 : i32
    %c0_i32_0 = arith.constant 0 : i32
    %c0_i32_1 = arith.constant 0 : i32
    return %c0_i32, %c0_i32_0 : i32, i32
  }
  func.func @transform_3(%arg0: i32, %arg1: i32) -> (i32, i32) {
    %c0_i32 = arith.constant 0 : i32
    %c0_i32_0 = arith.constant 0 : i32
    %c0_i32_1 = arith.constant 0 : i32
    return %c0_i32, %c0_i32_0 : i32, i32
  }
  func.func @transform_4(%arg0: i32, %arg1: i32) -> (i32, i32) {
    %c0_i32 = arith.constant 0 : i32
    %c0_i32_0 = arith.constant 0 : i32
    return %arg0, %c0_i32 : i32, i32
  }
}

</mosaic_0001>

<bundles_post_ra>
// kernel: tpu_custom_call.1
= control target key start
LH: loop header
LB: loop body
LE: loop exit
PB: predicated region body
PF: predicated region fallthrough
CT: control target
= control target key end

     0   :  { %9 = vsyncpa [#allocation4], 0  ;;  %s808_s0 = inlined_call_operand.hbm [shape: bf16[128,128], index: 0, kind: input, shape index: {}]   ;;  %s809_s1 = inlined_call_operand.hbm [shape: bf16[128,128], index: 1, kind: input, shape index: {}]   ;;  %s810_s2 = inlined_call_operand.hbm [shape: f32[128,128], index: 2, kind: input, shape index: {}]   ;;  %s811_s3 = inlined_call_operand.vmem [shape: f32[1,128], index: 3, kind: input, shape index: {}]   ;;  %s812_s4 = inlined_call_operand.hbm [shape: bf16[128,128], index: 4, kind: output, shape index: {}]  }
   0x1   :  { %10 = vsyncpa [#allocation7], 0 }
   0x2   :  { %11 = vsyncpa [#allocation5], 0  ;;  %s29_s17 = sshll.u32 %s809_s1, 4  ;;  %s751_s18 = smov [#allocation6]   ;;  %s30_s17 = int_to_ptr.hbm [resolvable:$true] %s29_s17 }
   0x3   :  { %s31_s19 = sshll.u32 %s751_s18, 4  ;;  %s16_s22 = sshll.u32 %s808_s0, 4  ;;  %s32_s19 = int_to_ptr.vmem [resolvable:$true] %s31_s19  ;;  %s17_s22 = int_to_ptr.hbm [resolvable:$true] %s16_s22 }
   0x4   :  { %s752_s23 = smov 64   ;;  %s753_s24 = smov 4  }
   0x5   :  { %37 = dma.hbm_to_vmem [thread:$0]  %s30_s17, 1024, %s32_s19, [#allocation7], %s752_s23, %s752_s23, %s753_s24  }
   0x6   :  { %s754_s25 = smov [#allocation3]   ;;  %s42_s1 = sshll.u32 %s810_s2, 4  ;;  %s43_s1 = int_to_ptr.hbm [resolvable:$true] %s42_s1 }
   0x7   :  { %s18_s26 = sshll.u32 %s754_s25, 4  ;;  %s755_s0 = smov [#allocation8]   ;;  %s19_s26 = int_to_ptr.vmem [resolvable:$true] %s18_s26 }
   0x8   :  { %24 = dma.hbm_to_vmem [thread:$0]  %s17_s22, 1024, %s19_s26, [#allocation4], %s752_s23, %s752_s23, %s753_s24  }
   0x9   :  { %s44_s29 = sshll.u32 %s755_s0, 4  ;;  %s756_s30 = smov 128   ;;  %s45_s29 = int_to_ptr.vmem [resolvable:$true] %s44_s29 }
   0xa   :  { %s757_s5 = smov 8  }
   0xb   :  { %50 = dma.hbm_to_vmem [thread:$0]  %s43_s1, 2048, %s45_s29, [#allocation7], %s756_s30, %s756_s30, %s757_s5  }
   0xc   :  { %745 = dma.done.wait [#allocation4], 1024  }
   0xd   :  { %746 = vsyncadd [#allocation4], 4294966272 }
   0xe   :  { %747 = dma.done.wait [#allocation7], 3072  }
   0xf   :  { %748 = vsyncadd [#allocation7], 4294964224  ;;  %v560_v0 = vld [vmem:[#allocation6 + $0x38] sm:$0xff]  ;;  %v559_v1 = vld [vmem:[#allocation6 + $0x30] sm:$0xff]  ;;  %s473_s10 = sshll.u32 %s812_s4, 4  ;;  %s474_s10 = int_to_ptr.hbm [resolvable:$true] %s473_s10 }
  0x10   :  { %616 = vmatpush.bf16.msra.mxu2 %v560_v0  ;;  %234 = vmatpush.bf16.msra.mxu0 %v560_v0  ;;  %v558_v2 = vld [vmem:[#allocation6 + $0x28] sm:$0xff]  ;;  %v557_v3 = vld [vmem:[#allocation6 + $0x20] sm:$0xff]  ;;  %v556_v4 = vld [vmem:[#allocation6 + $0x18] sm:$0xff] }
  0x11   :  { %v555_v5 = vld [vmem:[#allocation6 + $0x10] sm:$0xff]  ;;  %v554_v6 = vld [vmem:[#allocation6 + $0x8] sm:$0xff]  ;;  %v553_v7 = vld [vmem:[#allocation6] sm:$0xff] }
  0x12   :  { %v565_v8 = vld [vmem:[#allocation3 + $0x20] sm:$0xff]  ;;  %v566_v10 = vld [vmem:[#allocation3 + $0x28] sm:$0xff]  ;;  %v349_v12 = vld [vmem:[#allocation8 + $0x78] sm:$0xff] }
  0x13   :  { %v561_v9 = vld [vmem:[#allocation3] sm:$0xff]  ;;  %v562_v11 = vld [vmem:[#allocation3 + $0x8] sm:$0xff]  ;;  %v348_v13 = vld [vmem:[#allocation8 + $0x70] sm:$0xff]  ;;  %354 = vmatpush.msra.mxu1 %v349_v12  ;;  %624 = vmatpush.msra.mxu3 %v349_v12 }
  0x14   :  { %617 = vmatpush.bf16.msra.mxu2 %v559_v1  ;;  %235 = vmatpush.bf16.msra.mxu0 %v559_v1  ;;  %v347_v14 = vld [vmem:[#allocation8 + $0x68] sm:$0xff]  ;;  %v346_v15 = vld [vmem:[#allocation8 + $0x60] sm:$0xff]  ;;  %v345_v16 = vld [vmem:[#allocation8 + $0x58] sm:$0xff] }
  0x15   :  { %355 = vmatpush.msra.mxu1 %v348_v13  ;;  %625 = vmatpush.msra.mxu3 %v348_v13  ;;  %v344_v17 = vld [vmem:[#allocation8 + $0x50] sm:$0xff]  ;;  %v343_v18 = vld [vmem:[#allocation8 + $0x48] sm:$0xff]  ;;  %v342_v21 = vld [vmem:[#allocation8 + $0x40] sm:$0xff] }
  0x16   :  { %v567_v19 = vld [vmem:[#allocation3 + $0x30] sm:$0xff]  ;;  %v341_v22 = vld [vmem:[#allocation8 + $0x38] sm:$0xff]  ;;  %v339_v24 = vld [vmem:[#allocation8 + $0x28] sm:$0xff] }
  0x17   :  { %356 = vmatpush.msra.mxu1 %v347_v14  ;;  %626 = vmatpush.msra.mxu3 %v347_v14  ;;  %v563_v20 = vld [vmem:[#allocation3 + $0x10] sm:$0xff]  ;;  %v338_v25 = vld [vmem:[#allocation8 + $0x20] sm:$0xff]  ;;  %v337_v26 = vld [vmem:[#allocation8 + $0x18] sm:$0xff] }
  0x18   :  { %618 = vmatpush.bf16.msra.mxu2 %v558_v2  ;;  %236 = vmatpush.bf16.msra.mxu0 %v558_v2  ;;  %v340_v23 = vld [vmem:[#allocation8 + $0x30] sm:$0xff]  ;;  %v335_v28 = vld [vmem:[#allocation8 + $0x8] sm:$0xff]  ;;  %v568_v29 = vld [vmem:[#allocation3 + $0x38] sm:$0xff] }
  0x19   :  { %357 = vmatpush.msra.mxu1 %v346_v15  ;;  %627 = vmatpush.msra.mxu3 %v346_v15  ;;  %v336_v27 = vld [vmem:[#allocation8 + $0x10] sm:$0xff]  ;;  %v564_v30 = vld [vmem:[#allocation3 + $0x18] sm:$0xff]  ;;  %v334_v31 = vld [vmem:[#allocation8] sm:$0xff] }
  0x1a   :  { %v648_v49 = vld [vmem:[%s811_s3] ss:$0 sm:$0xff]  ;;  %s758_s3 = smov [#allocation9]  }
  0x1b   :  { %358 = vmatpush.msra.mxu1 %v345_v16  ;;  %628 = vmatpush.msra.mxu3 %v345_v16  ;;  %s471_s7 = sshll.u32 %s758_s3, 4  ;;  %s472_s7 = int_to_ptr.vmem [resolvable:$true] %s471_s7 }
  0x1c   :  { %619 = vmatpush.bf16.msra.mxu2 %v557_v3  ;;  %237 = vmatpush.bf16.msra.mxu0 %v557_v3 }
  0x1d   :  { %359 = vmatpush.msra.mxu1 %v344_v17  ;;  %629 = vmatpush.msra.mxu3 %v344_v17 }
  0x1f   :  { %360 = vmatpush.msra.mxu1 %v343_v18  ;;  %630 = vmatpush.msra.mxu3 %v343_v18 }
  0x20   :  { %620 = vmatpush.bf16.msra.mxu2 %v556_v4  ;;  %238 = vmatpush.bf16.msra.mxu0 %v556_v4 }
  0x21   :  { %361 = vmatpush.msra.mxu1 %v342_v21  ;;  %631 = vmatpush.msra.mxu3 %v342_v21 }
  0x23   :  { %362 = vmatpush.msra.mxu1 %v341_v22  ;;  %632 = vmatpush.msra.mxu3 %v341_v22 }
  0x24   :  { %621 = vmatpush.bf16.msra.mxu2 %v555_v5  ;;  %239 = vmatpush.bf16.msra.mxu0 %v555_v5 }
  0x25   :  { %363 = vmatpush.msra.mxu1 %v340_v23  ;;  %633 = vmatpush.msra.mxu3 %v340_v23 }
  0x27   :  { %364 = vmatpush.msra.mxu1 %v339_v24  ;;  %634 = vmatpush.msra.mxu3 %v339_v24 }
  0x28   :  { %622 = vmatpush.bf16.msra.mxu2 %v554_v6  ;;  %240 = vmatpush.bf16.msra.mxu0 %v554_v6 }
  0x29   :  { %365 = vmatpush.msra.mxu1 %v338_v25  ;;  %635 = vmatpush.msra.mxu3 %v338_v25 }
  0x2b   :  { %366 = vmatpush.msra.mxu1 %v337_v26  ;;  %636 = vmatpush.msra.mxu3 %v337_v26 }
  0x2c   :  { %623 = vmatpush.bf16.msra.mxu2 %v553_v7  ;;  %241 = vmatpush.bf16.msra.mxu0 %v553_v7 }
  0x2d   :  { %367 = vmatpush.msra.mxu1 %v336_v27  ;;  %637 = vmatpush.msra.mxu3 %v336_v27 }
  0x2f   :  { %262 = vmatmul.bf16.vlgmr.msra.gmra.mxu2 %v565_v8  ;;  %242 = vmatmul.bf16.vlgmr.msra.gmra.mxu0 %v561_v9 }
  0x30   :  { %368 = vmatpush.msra.mxu1 %v335_v28  ;;  %638 = vmatpush.msra.mxu3 %v335_v28 }
  0x32   :  { %369 = vmatpush.msra.mxu1 %v334_v31  ;;  %639 = vmatpush.msra.mxu3 %v334_v31 }
  0x3f   :  { %267 = vmatmul.bf16.gmra.mxu2 %v566_v10  ;;  %247 = vmatmul.bf16.gmra.mxu0 %v562_v11 }
  0x4f   :  { %272 = vmatmul.bf16.gmra.mxu2 %v567_v19  ;;  %252 = vmatmul.bf16.gmra.mxu0 %v563_v20 }
  0x5f   :  { %277 = vmatmul.bf16.gmra.mxu2 %v568_v29  ;;  %257 = vmatmul.bf16.gmra.mxu0 %v564_v30 }
  0xac   :  { %v243_v32 = vpop.f32.mrf.mxu0 }
  0xad   :  { %370 = vmatmul.f32.vlgmr.msra.gmra.mxu1 %v243_v32 }
  0xb2   :  { %v263_v33 = vpop.f32.mrf.mxu2 }
  0xb3   :  { %394 = vmatmul.f32.vlgmr.msra.gmra.mxu3 %v263_v33 }
  0xb4   :  { %v245_v34 = vpop.f32.mrf.mxu0 }
  0xb5   :  { %373 = vmatmul.f32.gmra.mxu1 %v245_v34 }
  0xba   :  { %v265_v35 = vpop.f32.mrf.mxu2 }
  0xbb   :  { %397 = vmatmul.f32.gmra.mxu3 %v265_v35 }
  0xbc   :  { %v248_v36 = vpop.f32.mrf.mxu0 }
  0xbd   :  { %376 = vmatmul.f32.gmra.mxu1 %v248_v36 }
  0xc2   :  { %v268_v37 = vpop.f32.mrf.mxu2 }
  0xc3   :  { %400 = vmatmul.f32.gmra.mxu3 %v268_v37 }
  0xc4   :  { %v250_v38 = vpop.f32.mrf.mxu0 }
  0xc5   :  { %379 = vmatmul.f32.gmra.mxu1 %v250_v38 }
  0xca   :  { %v270_v39 = vpop.f32.mrf.mxu2 }
  0xcb   :  { %403 = vmatmul.f32.gmra.mxu3 %v270_v39 }
  0xcc   :  { %v253_v40 = vpop.f32.mrf.mxu0 }
  0xcd   :  { %382 = vmatmul.f32.gmra.mxu1 %v253_v40 }
  0xd2   :  { %v273_v41 = vpop.f32.mrf.mxu2 }
  0xd3   :  { %406 = vmatmul.f32.gmra.mxu3 %v273_v41 }
  0xd4   :  { %v255_v42 = vpop.f32.mrf.mxu0 }
  0xd5   :  { %385 = vmatmul.f32.gmra.mxu1 %v255_v42 }
  0xda   :  { %v275_v43 = vpop.f32.mrf.mxu2 }
  0xdb   :  { %409 = vmatmul.f32.gmra.mxu3 %v275_v43 }
  0xdc   :  { %v258_v44 = vpop.f32.mrf.mxu0 }
  0xdd   :  { %388 = vmatmul.f32.gmra.mxu1 %v258_v44 }
  0xe2   :  { %v278_v45 = vpop.f32.mrf.mxu2 }
  0xe3   :  { %412 = vmatmul.f32.gmra.mxu3 %v278_v45 }
  0xe4   :  { %v260_v46 = vpop.f32.mrf.mxu0 }
  0xe5   :  { %391 = vmatmul.f32.gmra.mxu1 %v260_v46 }
  0xea   :  { %v280_v47 = vpop.f32.mrf.mxu2 }
  0xeb   :  { %415 = vmatmul.f32.gmra.mxu3 %v280_v47 }
 0x12a   :  { %v371_v48 = vpop.f32.mrf.mxu1 }
 0x12b   :  { %v372_v50 = vadd.f32 %v648_v49, %v371_v48 }
 0x12d   :  { %v419_v52 = vmax.f32 %v372_v50, 0.0 }
 0x132   :  { %v374_v51 = vpop.f32.mrf.mxu1 }
 0x133   :  { %v375_v53 = vadd.f32 %v648_v49, %v374_v51 }
 0x135   :  { %v420_v54 = vmax.f32 %v375_v53, 0.0 }
 0x136   :  { %v395_v55 = vpop.f32.mrf.mxu3 }
 0x137   :  { %v572_v56 = vpack.c.bf16 %v420_v54, %v419_v52  ;;  %v396_v58 = vadd.f32 %v648_v49, %v395_v55 }
 0x139   :  { %573 = vst [vmem:[#allocation9] sm:$0xff] %v572_v56   ;;  %v427_v62 = vmax.f32 %v396_v58, 0.0 }
 0x13a   :  { %v377_v57 = vpop.f32.mrf.mxu1 }
 0x13b   :  { %v378_v60 = vadd.f32 %v648_v49, %v377_v57 }
 0x13d   :  { %v421_v1 = vmax.f32 %v378_v60, 0.0 }
 0x13e   :  { %v398_v59 = vpop.f32.mrf.mxu3 }
 0x13f   :  { %v399_v61 = vadd.f32 %v648_v49, %v398_v59 }
 0x141   :  { %v428_v63 = vmax.f32 %v399_v61, 0.0 }
 0x142   :  { %v380_v0 = vpop.f32.mrf.mxu1 }
 0x143   :  { %v592_v2 = vpack.c.bf16 %v428_v63, %v427_v62  ;;  %v381_v3 = vadd.f32 %v648_v49, %v380_v0 }
 0x145   :  { %612 = vst [vmem:[#allocation9 + $0x20] sm:$0xff] %v592_v2   ;;  %v422_v4 = vmax.f32 %v381_v3, 0.0 }
 0x146   :  { %v401_v5 = vpop.f32.mrf.mxu3 }
 0x147   :  { %v577_v6 = vpack.c.bf16 %v422_v4, %v421_v1  ;;  %v402_v8 = vadd.f32 %v648_v49, %v401_v5 }
 0x149   :  { %609 = vst [vmem:[#allocation9 + $0x8] sm:$0xff] %v577_v6   ;;  %v429_v12 = vmax.f32 %v402_v8, 0.0 }
 0x14a   :  { %v383_v7 = vpop.f32.mrf.mxu1 }
 0x14b   :  { %v384_v10 = vadd.f32 %v648_v49, %v383_v7 }
 0x14d   :  { %v423_v15 = vmax.f32 %v384_v10, 0.0 }
 0x14e   :  { %v404_v9 = vpop.f32.mrf.mxu3 }
 0x14f   :  { %v405_v11 = vadd.f32 %v648_v49, %v404_v9 }
 0x151   :  { %v430_v13 = vmax.f32 %v405_v11, 0.0 }
 0x152   :  { %v386_v14 = vpop.f32.mrf.mxu1 }
 0x153   :  { %v597_v16 = vpack.c.bf16 %v430_v13, %v429_v12  ;;  %v387_v17 = vadd.f32 %v648_v49, %v386_v14 }
 0x155   :  { %613 = vst [vmem:[#allocation9 + $0x28] sm:$0xff] %v597_v16   ;;  %v424_v18 = vmax.f32 %v387_v17, 0.0 }
 0x156   :  { %v407_v19 = vpop.f32.mrf.mxu3 }
 0x157   :  { %v582_v20 = vpack.c.bf16 %v424_v18, %v423_v15  ;;  %v408_v22 = vadd.f32 %v648_v49, %v407_v19 }
 0x159   :  { %610 = vst [vmem:[#allocation9 + $0x10] sm:$0xff] %v582_v20   ;;  %v431_v26 = vmax.f32 %v408_v22, 0.0 }
 0x15a   :  { %v389_v21 = vpop.f32.mrf.mxu1 }
 0x15b   :  { %v390_v24 = vadd.f32 %v648_v49, %v389_v21 }
 0x15d   :  { %v425_v29 = vmax.f32 %v390_v24, 0.0 }
 0x15e   :  { %v410_v23 = vpop.f32.mrf.mxu3 }
 0x15f   :  { %v411_v25 = vadd.f32 %v648_v49, %v410_v23 }
 0x161   :  { %v432_v27 = vmax.f32 %v411_v25, 0.0 }
 0x162   :  { %v392_v28 = vpop.f32.mrf.mxu1 }
 0x163   :  { %v602_v30 = vpack.c.bf16 %v432_v27, %v431_v26  ;;  %v393_v31 = vadd.f32 %v648_v49, %v392_v28 }
 0x165   :  { %614 = vst [vmem:[#allocation9 + $0x30] sm:$0xff] %v602_v30   ;;  %v426_v32 = vmax.f32 %v393_v31, 0.0 }
 0x166   :  { %v413_v33 = vpop.f32.mrf.mxu3 }
 0x167   :  { %v587_v34 = vpack.c.bf16 %v426_v32, %v425_v29  ;;  %v414_v35 = vadd.f32 %v648_v49, %v413_v33 }
 0x169   :  { %611 = vst [vmem:[#allocation9 + $0x18] sm:$0xff] %v587_v34   ;;  %v433_v38 = vmax.f32 %v414_v35, 0.0 }
 0x16e   :  { %v416_v36 = vpop.f32.mrf.mxu3 }
 0x16f   :  { %v417_v37 = vadd.f32 %v648_v49, %v416_v36 }
 0x171   :  { %v434_v39 = vmax.f32 %v417_v37, 0.0 }
 0x173   :  { %v607_v40 = vpack.c.bf16 %v434_v39, %v433_v38 }
 0x175   :  { %615 = vst [vmem:[#allocation9 + $0x38] sm:$0xff] %v607_v40  }
 0x176   :  { %479 = dma.vmem_to_hbm [thread:$0]  %s472_s7, 1024, %s474_s10, [#allocation5], %s752_s23, %s752_s23, %s753_s24  }
 0x177   :  { %749 = dma.done.wait [#allocation5], 1024  }
 0x178   :  { %750 = vsyncadd [#allocation5], 4294966272 }
 0x179   :  { %484 = vsyncpa [#allocation4], 1 }
 0x17a   :  { %485 = vsyncpa [#allocation7], 1 }
 0x17b   :  { %486 = vsyncpa [#allocation5], 1 }

</bundles_post_ra>
